<compile_context>
chip_gen: v5e
topology: v5e:2x2
jax: 0.10.0
libtpu: 0.0.40
codegen_flags: <defaults>
</compile_context>

<pallas_src>
import jax
import jax.numpy as jnp
from jax.experimental import pallas as pl
from jax.experimental.pallas import tpu as pltpu

HIDDEN = 128         # per-branch hidden width (PyTorch Net uses 128)
OUT_PAD = 128        # lane-dense output slab width


def _round_up(n, m):
    return (n + m - 1) // m * m


def _net_forward_kernel(
    x_ref,       # [TB, S]              f32
    w1_ref,      # [S, 2*HIDDEN]        bf16 (or f32 parity mode)
    b1_ref,      # [1, 2*HIDDEN]        f32
    w2_ref,      # [2*HIDDEN, OUT_PAD]  bf16 (or f32), block-diagonal
    b2_ref,      # [1, OUT_PAD]         f32
    out_ref,     # [TB, OUT_PAD]        f32 (cols 0:A = logits, col A = value)
):
    # Fused layer 1: bf16 MXU operands, f32 accumulate, f32 bias + tanh (VPU/EUP).
    x = x_ref[...].astype(w1_ref.dtype)
    h = jnp.tanh(
        jnp.dot(x, w1_ref[...], preferred_element_type=jnp.float32)
        + b1_ref[...]
    )

    # Fused layer 2 (block-diagonal weights): one matmul, one lane-dense store.
    out = (
        jnp.dot(h.astype(w2_ref.dtype), w2_ref[...],
                preferred_element_type=jnp.float32)
        + b2_ref[...]
    )
    out_ref[...] = out.astype(out_ref.dtype)


def pack_params(params, dtype=jnp.bfloat16):
    """Pack per-branch parameters into fused tensors. Call ONCE, not per step.

    params: dict with w_pi1[S,H], b_pi1[H], w_pi2[H,A], b_pi2[A],
            w_v1[S,H], b_v1[H], w_v2[H,1], b_v2[1]  (weights already [in,out]).
    dtype:  matmul operand dtype (bf16 for speed / halved weight DMA;
            jnp.float32 for exact parity).  Biases always stay f32.
    """
    S, H = params["w_pi1"].shape
    A = params["w_pi2"].shape[1]
    out_cols = max(OUT_PAD, _round_up(A + 1, OUT_PAD))

    w1 = jnp.concatenate([params["w_pi1"], params["w_v1"]], axis=1)  # [S, 2H]
    b1 = jnp.concatenate([params["b_pi1"], params["b_v1"]]).reshape(1, 2 * H)

    w2 = jnp.zeros((2 * H, out_cols), jnp.float32)
    w2 = w2.at[:H, :A].set(params["w_pi2"])          # policy head block
    w2 = w2.at[H:, A:A + 1].set(params["w_v2"])      # value head block
    b2 = jnp.zeros((1, out_cols), jnp.float32)
    b2 = b2.at[0, :A].set(params["b_pi2"])
    b2 = b2.at[0, A:A + 1].set(params["b_v2"])

    return {
        "w1": w1.astype(dtype),
        "b1": b1.astype(jnp.float32),
        "w2": w2.astype(dtype),
        "b2": b2.astype(jnp.float32),
        "a_dim": A,
    }


def net_forward(x, packed, *, batch_tile=512):
    """Two-branch MLP forward in a single fused Pallas kernel.

    x: [B, s_dim] float32; packed: output of pack_params.
    batch_tile: rows per grid step (amortizes launch overhead at large B and
    lets v7x's two TensorCores split the batch; collapses to one step at
    small B).
    Returns (logits [B, A], values [B, 1]).
    """
    B, S = x.shape
    A = packed["a_dim"]
    H2 = packed["w1"].shape[1]          # 2 * HIDDEN
    out_cols = packed["w2"].shape[1]    # OUT_PAD

    # Batch tiling: TB is a multiple of 8 (sublane), x's lane dim S stays
    # full-extent so the (8,128) block constraint is satisfied for any S.
    TB = min(batch_tile, _round_up(B, 8))
    B_pad = _round_up(B, TB)
    if B_pad != B:
        x = jnp.pad(x, ((0, B_pad - B), (0, 0)))
    grid = (pl.cdiv(B_pad, TB),)

    def _nbytes(a):
        return a.size * jnp.dtype(a.dtype).itemsize

    cost = pl.CostEstimate(
        flops=2 * B_pad * (S * H2 + H2 * out_cols),
        transcendentals=B_pad * H2,
        bytes_accessed=(
            B_pad * S * 4
            + _nbytes(packed["w1"]) + _nbytes(packed["b1"])
            + _nbytes(packed["w2"]) + _nbytes(packed["b2"])
            + B_pad * out_cols * 4
        ),
    )

    out = pl.pallas_call(
        _net_forward_kernel,
        out_shape=jax.ShapeDtypeStruct((B_pad, out_cols), jnp.float32),
        grid=grid,
        in_specs=[
            pl.BlockSpec((TB, S), lambda i: (i, 0)),          # x: batch-tiled
            pl.BlockSpec((S, H2), lambda i: (0, 0)),          # w1: resident
            pl.BlockSpec((1, H2), lambda i: (0, 0)),          # b1: resident
            pl.BlockSpec((2 * HIDDEN, out_cols), lambda i: (0, 0)),  # w2
            pl.BlockSpec((1, out_cols), lambda i: (0, 0)),    # b2
        ],
        out_specs=pl.BlockSpec((TB, out_cols), lambda i: (i, 0)),
        compiler_params=pltpu.CompilerParams(
            dimension_semantics=("parallel",),
        ),
        cost_estimate=cost,
    )(x, packed["w1"], packed["b1"], packed["w2"], packed["b2"])

    logits = out[:B, :A]
    values = out[:B, A:A + 1]
    return logits, values


def init_params(key, s_dim, a_dim, hidden=HIDDEN):
    """Deterministic init mimicking set_init: weights ~ N(0, 0.1), biases = 0.1.

    Weights are stored transposed ([in, out]) relative to torch's [out, in].
    """
    ks = jax.random.split(key, 4)
    return {
        "w_pi1": 0.1 * jax.random.normal(ks[0], (s_dim, hidden), jnp.float32),
        "b_pi1": jnp.full((hidden,), 0.1, jnp.float32),
        "w_pi2": 0.1 * jax.random.normal(ks[1], (hidden, a_dim), jnp.float32),
        "b_pi2": jnp.full((a_dim,), 0.1, jnp.float32),
        "w_v1":  0.1 * jax.random.normal(ks[2], (s_dim, hidden), jnp.float32),
        "b_v1":  jnp.full((hidden,), 0.1, jnp.float32),
        "w_v2":  0.1 * jax.random.normal(ks[3], (hidden, 1), jnp.float32),
        "b_v2":  jnp.full((1,), 0.1, jnp.float32),
    }


def _reference_forward(x, p):
    pi1 = jnp.tanh(x @ p["w_pi1"] + p["b_pi1"])
    logits = pi1 @ p["w_pi2"] + p["b_pi2"]
    v1 = jnp.tanh(x @ p["w_v1"] + p["b_v1"])
    values = v1 @ p["w_v2"] + p["b_v2"]
    return logits, values


if __name__ == "__main__":
    key = jax.random.PRNGKey(0)
    k_x, k_p, k_xb = jax.random.split(key, 3)

    B, S_DIM, A_DIM = 8, 32, 8
    x = jax.random.normal(k_x, (B, S_DIM), jnp.float32)
    params = init_params(k_p, S_DIM, A_DIM)
    ref_logits, ref_values = _reference_forward(x, params)

    # --- f32 parity mode: exact check against the reference ---------------
    packed_f32 = jax.block_until_ready(pack_params(params, dtype=jnp.float32))
    logits, values = net_forward(x, packed_f32)
    jax.block_until_ready((logits, values))
    assert logits.shape == (B, A_DIM)
    assert values.shape == (B, 1)
    assert jnp.allclose(logits, ref_logits, atol=1e-5, rtol=1e-5)
    assert jnp.allclose(values, ref_values, atol=1e-5, rtol=1e-5)

    # --- bf16 perf mode: relaxed tolerance (bf16 MXU operands, f32 accum) --
    packed_bf16 = jax.block_until_ready(pack_params(params))
    logits_b, values_b = net_forward(x, packed_bf16)
    jax.block_until_ready((logits_b, values_b))
    assert jnp.allclose(logits_b, ref_logits, atol=2e-2, rtol=2e-2)
    assert jnp.allclose(values_b, ref_values, atol=2e-2, rtol=2e-2)

    # --- multi-step batch grid path (small tile to exercise the grid) ------
    BB = 64
    xb = jax.random.normal(k_xb, (BB, S_DIM), jnp.float32)
    ref_lg, ref_vg = _reference_forward(xb, params)
    lg, vg = net_forward(xb, packed_bf16, batch_tile=16)   # grid = (4,)
    jax.block_until_ready((lg, vg))
    assert lg.shape == (BB, A_DIM) and vg.shape == (BB, 1)
    assert jnp.allclose(lg, ref_lg, atol=2e-2, rtol=2e-2)
    assert jnp.allclose(vg, ref_vg, atol=2e-2, rtol=2e-2)

    print("KERNEL_OK")
</pallas_src>

<mosaic_0001>
module attributes {stable_mosaic.version = 11 : i64} {
  func.func @_net_forward_kernel(%arg0: i32, %arg1: memref<8x32xf32, #tpu.memory_space<vmem>>, %arg2: memref<32x256xf32, #tpu.memory_space<vmem>>, %arg3: memref<1x256xf32, #tpu.memory_space<vmem>>, %arg4: memref<256x128xf32, #tpu.memory_space<vmem>>, %arg5: memref<1x128xf32, #tpu.memory_space<vmem>>, %arg6: memref<8x128xf32, #tpu.memory_space<vmem>>) attributes {dimension_semantics = [#tpu.dimension_semantics<parallel>], iteration_bounds = array<i64: 1>, scalar_prefetch = 0 : i64, scratch_operands = 0 : i64, tpu.core_type = #tpu.core_type<tc>, window_params = [{transform_indices = @transform_0, window_bounds = array<i64: 8, 32>}, {pipeline_mode = #tpu.pipeline_mode<synchronous>, transform_indices = @transform_1, window_bounds = array<i64: 32, 256>}, {pipeline_mode = #tpu.pipeline_mode<synchronous>, transform_indices = @transform_2, window_bounds = array<i64: 1, 256>}, {pipeline_mode = #tpu.pipeline_mode<synchronous>, transform_indices = @transform_3, window_bounds = array<i64: 256, 128>}, {pipeline_mode = #tpu.pipeline_mode<synchronous>, transform_indices = @transform_4, window_bounds = array<i64: 1, 128>}, {transform_indices = @transform_5, window_bounds = array<i64: 8, 128>}]} {
    %c0 = arith.constant 0 : index
    %c0_0 = arith.constant 0 : index
    %0 = vector.load %arg1[%c0, %c0_0] : memref<8x32xf32, #tpu.memory_space<vmem>>, vector<8x32xf32>
    %c0_1 = arith.constant 0 : index
    %c0_2 = arith.constant 0 : index
    %1 = vector.load %arg2[%c0_1, %c0_2] : memref<32x256xf32, #tpu.memory_space<vmem>>, vector<32x256xf32>
    %cst = arith.constant dense<0.000000e+00> : vector<8x256xf32>
    %2 = tpu.matmul %0, %1, %cst {dimension_numbers = #tpu.dot_dimension_numbers<[1], [0], [0], [1], [0, 0, 1, 1], [], []>} : vector<8x32xf32>, vector<32x256xf32>, vector<8x256xf32> -> vector<8x256xf32>
    %c0_3 = arith.constant 0 : index
    %c0_4 = arith.constant 0 : index
    %3 = vector.load %arg3[%c0_3, %c0_4] : memref<1x256xf32, #tpu.memory_space<vmem>>, vector<1x256xf32>
    %4 = vector.broadcast %3 : vector<1x256xf32> to vector<8x256xf32>
    %5 = arith.addf %2, %4 : vector<8x256xf32>
    %6 = math.tanh %5 : vector<8x256xf32>
    %c0_5 = arith.constant 0 : index
    %c0_6 = arith.constant 0 : index
    %7 = vector.load %arg4[%c0_5, %c0_6] : memref<256x128xf32, #tpu.memory_space<vmem>>, vector<256x128xf32>
    %cst_7 = arith.constant dense<0.000000e+00> : vector<8x128xf32>
    %8 = tpu.matmul %6, %7, %cst_7 {dimension_numbers = #tpu.dot_dimension_numbers<[1], [0], [0], [1], [0, 0, 1, 1], [], []>} : vector<8x256xf32>, vector<256x128xf32>, vector<8x128xf32> -> vector<8x128xf32>
    %c0_8 = arith.constant 0 : index
    %c0_9 = arith.constant 0 : index
    %9 = vector.load %arg5[%c0_8, %c0_9] : memref<1x128xf32, #tpu.memory_space<vmem>>, vector<1x128xf32>
    %10 = vector.broadcast %9 : vector<1x128xf32> to vector<8x128xf32>
    %11 = arith.addf %8, %10 : vector<8x128xf32>
    %c0_10 = arith.constant 0 : index
    %c0_11 = arith.constant 0 : index
    %12 = vector.load %arg6[%c0_10, %c0_11] : memref<8x128xf32, #tpu.memory_space<vmem>>, vector<8x128xf32>
    tpu.vector_store %arg6[%c0_10, %c0_11], %11 {strides = array<i32>} : memref<8x128xf32, #tpu.memory_space<vmem>>, vector<8x128xf32>,
    return
  }
  func.func @transform_0(%arg0: i32) -> (i32, i32) {
    %c0_i32 = arith.constant 0 : i32
    %c0_i32_0 = arith.constant 0 : i32
    return %arg0, %c0_i32 : i32, i32
  }
  func.func @transform_1(%arg0: i32) -> (i32, i32) {
    %c0_i32 = arith.constant 0 : i32
    %c0_i32_0 = arith.constant 0 : i32
    %c0_i32_1 = arith.constant 0 : i32
    return %c0_i32, %c0_i32_0 : i32, i32
  }
  func.func @transform_2(%arg0: i32) -> (i32, i32) {
    %c0_i32 = arith.constant 0 : i32
    %c0_i32_0 = arith.constant 0 : i32
    %c0_i32_1 = arith.constant 0 : i32
    return %c0_i32, %c0_i32_0 : i32, i32
  }
  func.func @transform_3(%arg0: i32) -> (i32, i32) {
    %c0_i32 = arith.constant 0 : i32
    %c0_i32_0 = arith.constant 0 : i32
    %c0_i32_1 = arith.constant 0 : i32
    return %c0_i32, %c0_i32_0 : i32, i32
  }
  func.func @transform_4(%arg0: i32) -> (i32, i32) {
    %c0_i32 = arith.constant 0 : i32
    %c0_i32_0 = arith.constant 0 : i32
    %c0_i32_1 = arith.constant 0 : i32
    return %c0_i32, %c0_i32_0 : i32, i32
  }
  func.func @transform_5(%arg0: i32) -> (i32, i32) {
    %c0_i32 = arith.constant 0 : i32
    %c0_i32_0 = arith.constant 0 : i32
    return %arg0, %c0_i32 : i32, i32
  }
}

</mosaic_0001>

<bundles_post_ra>
// kernel: tpu_custom_call.1
= control target key start
LH: loop header
LB: loop body
LE: loop exit
PB: predicated region body
PF: predicated region fallthrough
CT: control target
= control target key end

     0   :  { %10 = vsyncpa [#allocation3], 0  ;;  %s438_s0 = inlined_call_operand.hbm [shape: f32[8,32], index: 0, kind: input, shape index: {}]   ;;  %s439_s1 = inlined_call_operand.hbm [shape: f32[32,256], index: 1, kind: input, shape index: {}]   ;;  %s440_s2 = inlined_call_operand.hbm [shape: f32[1,256], index: 2, kind: input, shape index: {}]   ;;  %s441_s3 = inlined_call_operand.hbm [shape: f32[256,128], index: 3, kind: input, shape index: {}]   ;;  %s442_s4 = inlined_call_operand.vmem [shape: f32[1,128], index: 4, kind: input, shape index: {}]   ;;  %s443_s5 = inlined_call_operand.hbm [shape: f32[8,128], index: 5, kind: output, shape index: {}]  }
   0x1   :  { %11 = vsyncpa [#allocation6], 0 }
   0x2   :  { %12 = vsyncpa [#allocation9], 0  ;;  %s29_s20 = sshll.u32 %s439_s1, 4  ;;  %s30_s20 = int_to_ptr.hbm [resolvable:$true] %s29_s20 }
   0x3   :  { %13 = vsyncpa [#allocation4], 0  ;;  %s381_s21 = smov [#allocation5]   ;;  %s19_s25 = sshll.u32 %s438_s0, 4  ;;  %s20_s25 = int_to_ptr.hbm [resolvable:$true] %s19_s25 }
   0x4   :  { %s31_s22 = sshll.u32 %s381_s21, 4  ;;  %s382_s26 = smov 256   ;;  %s32_s22 = int_to_ptr.vmem [resolvable:$true] %s31_s22 }
   0x5   :  { %s383_s27 = smov 16   ;;  %s384_s28 = smov [#allocation2]  }
   0x6   :  { %37 = dma.hbm_to_vmem [thread:$0]  %s30_s20, 1024, %s32_s22, [#allocation6], %s382_s26, %s382_s26, %s383_s27  }
   0x7   :  { %s21_s29 = sshll.u32 %s384_s28, 4  ;;  %s43_s7 = sshll.u32 %s440_s2, 4  ;;  %s22_s29 = int_to_ptr.vmem [resolvable:$true] %s21_s29  ;;  %s44_s7 = int_to_ptr.hbm [resolvable:$true] %s43_s7 }
   0x8   :  { %24 = dma.hbm_to_vmem [thread:$0]  %s20_s25, 128, %s22_s29, [#allocation3]  }
   0x9   :  { %s53_s9 = sshll.u32 %s441_s3, 4  ;;  %s385_s10 = smov [#allocation7]   ;;  %s54_s9 = int_to_ptr.hbm [resolvable:$true] %s53_s9 }
   0xa   :  { %s45_s11 = sshll.u32 %s385_s10, 4  ;;  %s386_s0 = smov [#allocation8]   ;;  %s46_s11 = int_to_ptr.vmem [resolvable:$true] %s45_s11 }
   0xb   :  { %48 = dma.hbm_to_vmem [thread:$0]  %s44_s7, 32, %s46_s11, [#allocation6]  }
   0xc   :  { %s55_s12 = sshll.u32 %s386_s0, 4  ;;  %s387_s13 = smov 128   ;;  %s56_s12 = int_to_ptr.vmem [resolvable:$true] %s55_s12 }
   0xd   :  { %s388_s14 = smov 8  }
   0xe   :  { %61 = dma.hbm_to_vmem [thread:$0]  %s54_s9, 4096, %s56_s12, [#allocation9], %s387_s13, %s387_s13, %s388_s14  }
   0xf   :  { %373 = dma.done.wait [#allocation3], 128  }
  0x10   :  { %374 = vsyncadd [#allocation3], 4294967168 }
  0x11   :  { %375 = dma.done.wait [#allocation6], 1056  }
  0x12   :  { %376 = vsyncadd [#allocation6], 4294966240 }
  0x13   :  { %377 = dma.done.wait [#allocation9], 4096  }
  0x14   :  { %378 = vsyncadd [#allocation9], 4294963200  ;;  %v87_v0 = vld [vmem:[#allocation5 + $0x30] sm:$0xff]  ;;  %v85_v1 = vld [vmem:[#allocation5 + $0x20] sm:$0xff]  ;;  %vm95_vm0 = vcmask 261120   ;;  %s389_s15 = smov [#allocation10]  }
  0x15   :  { %v88_v2 = vld [vmem:[#allocation5 + $0x38] sm:$0xff]  ;;  %111 = vmatpush.msra.mxu0 %v87_v0  ;;  %v86_v3 = vld [vmem:[#allocation5 + $0x28] sm:$0xff]  ;;  %v83_v4 = vld [vmem:[#allocation5 + $0x10] sm:$0xff]  ;;  %s223_s16 = sshll.u32 %s389_s15, 4  ;;  %s225_s19 = sshll.u32 %s443_s5, 4  ;;  %s224_s16 = int_to_ptr.vmem [resolvable:$true] %s223_s16  ;;  %s226_s19 = int_to_ptr.hbm [resolvable:$true] %s225_s19 }
  0x16   :  { %131 = vmatpush.msra.mxu1 %v88_v2  ;;  %v84_v5 = vld [vmem:[#allocation5 + $0x18] sm:$0xff]  ;;  %v81_v9 = vld [vmem:[#allocation5] sm:$0xff]  ;;  %v82_v10 = vld [vmem:[#allocation5 + $0x8] sm:$0xff] }
  0x17   :  { %112 = vmatpush.msra.mxu0 %v85_v1  ;;  %v156_v6 = vld [vmem:[#allocation8 + $0x78] sm:$0xff]  ;;  %v155_v7 = vld [vmem:[#allocation8 + $0x70] sm:$0xff]  ;;  %v154_v13 = vld [vmem:[#allocation8 + $0x68] sm:$0xff] }
  0x18   :  { %132 = vmatpush.msra.mxu1 %v86_v3  ;;  %v172_v8 = vld [vmem:[#allocation8 + $0xf8] sm:$0xff]  ;;  %177 = vmatpush.msra.mxu2 %v156_v6  ;;  %v171_v11 = vld [vmem:[#allocation8 + $0xf0] sm:$0xff]  ;;  %v170_v14 = vld [vmem:[#allocation8 + $0xe8] sm:$0xff] }
  0x19   :  { %197 = vmatpush.msra.mxu3 %v172_v8  ;;  %113 = vmatpush.msra.mxu0 %v83_v4  ;;  %v80_v12 = vld [vmem:[#allocation2] sm:$0xff]  ;;  %v153_v15 = vld [vmem:[#allocation8 + $0x60] sm:$0xff]  ;;  %v150_v21 = vld [vmem:[#allocation8 + $0x48] sm:$0xff] }
  0x1a   :  { %133 = vmatpush.msra.mxu1 %v84_v5  ;;  %178 = vmatpush.msra.mxu2 %v155_v7  ;;  %v169_v16 = vld [vmem:[#allocation8 + $0xe0] sm:$0xff]  ;;  %v152_v17 = vld [vmem:[#allocation8 + $0x58] sm:$0xff]  ;;  %v151_v19 = vld [vmem:[#allocation8 + $0x50] sm:$0xff] }
  0x1b   :  { %198 = vmatpush.msra.mxu3 %v171_v11  ;;  %114 = vmatpush.msra.mxu0 %v81_v9  ;;  %v168_v18 = vld [vmem:[#allocation8 + $0xd8] sm:$0xff]  ;;  %v167_v20 = vld [vmem:[#allocation8 + $0xd0] sm:$0xff]  ;;  %v166_v22 = vld [vmem:[#allocation8 + $0xc8] sm:$0xff] }
  0x1c   :  { %134 = vmatpush.msra.mxu1 %v82_v10  ;;  %237 = vmatmul.msk.f32.vlgmr.msra.gmra.mxu0 %vm95_vm0, %v80_v12  ;;  %v149_v23 = vld [vmem:[#allocation8 + $0x40] sm:$0xff]  ;;  %v148_v25 = vld [vmem:[#allocation8 + $0x38] sm:$0xff]  ;;  %v147_v27 = vld [vmem:[#allocation8 + $0x30] sm:$0xff] }
  0x1d   :  { %238 = vmatmul.msk.f32.vlgmr.msra.gmra.mxu1 %vm95_vm0, %v80_v12  ;;  %179 = vmatpush.msra.mxu2 %v154_v13  ;;  %v165_v24 = vld [vmem:[#allocation8 + $0xc0] sm:$0xff]  ;;  %v164_v26 = vld [vmem:[#allocation8 + $0xb8] sm:$0xff]  ;;  %v163_v28 = vld [vmem:[#allocation8 + $0xb0] sm:$0xff] }
  0x1e   :  { %199 = vmatpush.msra.mxu3 %v170_v14  ;;  %v146_v29 = vld [vmem:[#allocation8 + $0x28] sm:$0xff]  ;;  %v145_v30 = vld [vmem:[#allocation8 + $0x20] sm:$0xff]  ;;  %v144_v32 = vld [vmem:[#allocation8 + $0x18] sm:$0xff] }
  0x1f   :  { %180 = vmatpush.msra.mxu2 %v153_v15  ;;  %v162_v31 = vld [vmem:[#allocation8 + $0xa8] sm:$0xff]  ;;  %v161_v33 = vld [vmem:[#allocation8 + $0xa0] sm:$0xff]  ;;  %v143_v34 = vld [vmem:[#allocation8 + $0x10] sm:$0xff] }
  0x20   :  { %200 = vmatpush.msra.mxu3 %v169_v16  ;;  %v160_v35 = vld [vmem:[#allocation8 + $0x98] sm:$0xff]  ;;  %v142_v36 = vld [vmem:[#allocation8 + $0x8] sm:$0xff]  ;;  %v159_v37 = vld [vmem:[#allocation8 + $0x90] sm:$0xff] }
  0x21   :  { %181 = vmatpush.msra.mxu2 %v152_v17  ;;  %v141_v38 = vld [vmem:[#allocation8] sm:$0xff]  ;;  %v158_v39 = vld [vmem:[#allocation8 + $0x88] sm:$0xff]  ;;  %v89_v41 = vld [vmem:[#allocation7] sm:$0x3] }
  0x22   :  { %201 = vmatpush.msra.mxu3 %v168_v18  ;;  %v157_v40 = vld [vmem:[#allocation8 + $0x80] sm:$0xff]  ;;  %v91_v42 = vperm.slane %v89_v41, 0  ;;  %v92_v43 = vperm.slane %v89_v41, 1  ;;  %v248_v50 = vld [vmem:[%s442_s4] ss:$0 sm:$0xff] }
  0x23   :  { %182 = vmatpush.msra.mxu2 %v151_v19 }
  0x24   :  { %202 = vmatpush.msra.mxu3 %v167_v20 }
  0x25   :  { %183 = vmatpush.msra.mxu2 %v150_v21 }
  0x26   :  { %203 = vmatpush.msra.mxu3 %v166_v22 }
  0x27   :  { %184 = vmatpush.msra.mxu2 %v149_v23 }
  0x28   :  { %204 = vmatpush.msra.mxu3 %v165_v24 }
  0x29   :  { %185 = vmatpush.msra.mxu2 %v148_v25 }
  0x2a   :  { %205 = vmatpush.msra.mxu3 %v164_v26 }
  0x2b   :  { %186 = vmatpush.msra.mxu2 %v147_v27 }
  0x2c   :  { %206 = vmatpush.msra.mxu3 %v163_v28 }
  0x2d   :  { %187 = vmatpush.msra.mxu2 %v146_v29 }
  0x2e   :  { %207 = vmatpush.msra.mxu3 %v162_v31 }
  0x2f   :  { %188 = vmatpush.msra.mxu2 %v145_v30 }
  0x30   :  { %208 = vmatpush.msra.mxu3 %v161_v33 }
  0x31   :  { %189 = vmatpush.msra.mxu2 %v144_v32 }
  0x32   :  { %209 = vmatpush.msra.mxu3 %v160_v35 }
  0x33   :  { %190 = vmatpush.msra.mxu2 %v143_v34 }
  0x34   :  { %210 = vmatpush.msra.mxu3 %v159_v37 }
  0x35   :  { %191 = vmatpush.msra.mxu2 %v142_v36 }
  0x36   :  { %211 = vmatpush.msra.mxu3 %v158_v39 }
  0x37   :  { %192 = vmatpush.msra.mxu2 %v141_v38 }
  0x38   :  { %212 = vmatpush.msra.mxu3 %v157_v40 }
  0x99   :  { %v116_v44 = vpop.f32.mrf.mxu0 }
  0x9a   :  { %v136_v45 = vpop.f32.mrf.mxu1  ;;  %v117_v46 = vadd.f32 %v116_v44, %v91_v42 }
  0x9b   :  { %v137_v47 = vadd.f32 %v136_v45, %v92_v43 }
  0x9c   :  { %249 = vtanh.f32 %v117_v46 }
  0x9d   :  { %251 = vtanh.f32 %v137_v47 }
  0xa2   :  { %v250_v48 = vpop.eup %249 }
  0xa3   :  { %v252_v49 = vpop.eup %251  ;;  %193 = vmatmul.f32.vlgmr.msra.gmra.mxu2 %v250_v48 }
  0xa4   :  { %213 = vmatmul.f32.vlgmr.msra.gmra.mxu3 %v252_v49 }
 0x126   :  { %v194_v51 = vpop.f32.mrf.mxu2 }
 0x127   :  { %v195_v52 = vadd.f32 %v248_v50, %v194_v51  ;;  %v214_v53 = vpop.f32.mrf.mxu3 }
 0x129   :  { %v215_v54 = vadd.f32 %v214_v53, %v195_v52 }
 0x12b   :  { %217 = vst [vmem:[#allocation10] sm:$0xff] %v215_v54 }
 0x12c   :  { %228 = dma.vmem_to_hbm [thread:$0]  %s224_s16, 128, %s226_s19, [#allocation4]  }
 0x12d   :  { %379 = dma.done.wait [#allocation4], 128  }
 0x12e   :  { %380 = vsyncadd [#allocation4], 4294967168 }
 0x12f   :  { %233 = vsyncpa [#allocation3], 1 }
 0x130   :  { %234 = vsyncpa [#allocation6], 1 }
 0x131   :  { %235 = vsyncpa [#allocation9], 1 }
 0x132   :  { %236 = vsyncpa [#allocation4], 1 }

</bundles_post_ra>
